<compile_context>
chip_gen: v6e
topology: v6e:2x2x1
jax: 0.10.0
libtpu: 0.0.40
codegen_flags: <defaults>
</compile_context>

<pallas_src>
import functools

import jax
import jax.numpy as jnp
from jax.experimental import pallas as pl
from jax.experimental.pallas import tpu as pltpu

EPS = 1e-5


def _round_up(x, m):
    return (x + m - 1) // m * m


def _vmem_budgets():
    """(scoped vmem_limit_bytes, target bytes of one streamed x block)."""
    try:
        cap = int(pltpu.get_tpu_info().vmem_capacity_bytes)
    except Exception:
        cap = 64 * 1024 * 1024          # conservative (v7x-sized) fallback
    if cap >= 96 * 1024 * 1024:         # v5e / v6e: 128 MiB VMEM
        return 100 * 1024 * 1024, 10 * 1024 * 1024
    # v7x: 64 MiB per TensorCore -> leave headroom for compiler scratch
    return 44 * 1024 * 1024, 5 * 1024 * 1024


# ---------------- Pallas kernels ----------------

def _fused_bn_kernel(x_ref, gamma_ref, beta_ref, o_ref, *, eps):
    """Single-pass BN on a (B, tc, hw) channel tile (channels independent)."""
    x = x_ref[...].astype(jnp.float32)                        # (B, tc, hw)
    b, _, hw = x.shape
    inv_hw = 1.0 / hw

    # Per-(sample, channel) mean and centered second moment (stable).
    row_mean = jnp.sum(x, axis=2, keepdims=True) * inv_hw     # (B, tc, 1)
    d = x - row_mean
    row_m2 = jnp.sum(d * d, axis=2, keepdims=True)            # (B, tc, 1)

    # Chan et al. parallel combine across the batch axis (equal counts hw).
    chan_mean = jnp.mean(row_mean, axis=0, keepdims=True)     # (1, tc, 1)
    dm = row_mean - chan_mean
    chan_m2 = (jnp.sum(row_m2, axis=0, keepdims=True)
               + hw * jnp.sum(dm * dm, axis=0, keepdims=True))
    var = chan_m2 * (1.0 / (b * hw))                          # biased variance

    scale = gamma_ref[...] * jax.lax.rsqrt(var + eps)         # (1, tc, 1)
    bias = beta_ref[...] - chan_mean * scale
    o_ref[...] = (x * scale + bias).astype(o_ref.dtype)


def _row_stats_kernel(x_ref, sum_ref, m2_ref, *, hw, tlane):
    """Per-row sum + centered M2, Chan-combined across lane tiles (axis j)."""
    j = pl.program_id(1)
    x = x_ref[...].astype(jnp.float32)                        # (tbr, tlane)

    if hw % tlane == 0:                                       # static branch
        cnt = float(tlane)
        s = jnp.sum(x, axis=1, keepdims=True)                 # (tbr, 1)
        mu = s * (1.0 / tlane)
        d = x - mu
        m2 = jnp.sum(d * d, axis=1, keepdims=True)
    else:
        # Partial last lane tile: mask out-of-bounds columns.
        col = j * tlane + jax.lax.broadcasted_iota(jnp.int32, x.shape, 1)
        valid = col < hw
        cnt = jnp.minimum(tlane, hw - j * tlane).astype(jnp.float32)
        s = jnp.sum(jnp.where(valid, x, 0.0), axis=1, keepdims=True)
        mu = s / cnt
        d = jnp.where(valid, x - mu, 0.0)
        m2 = jnp.sum(d * d, axis=1, keepdims=True)

    @pl.when(j == 0)
    def _():
        sum_ref[...] = s
        m2_ref[...] = m2

    @pl.when(j > 0)
    def _():
        # Chan pairwise combine of (previous tiles) with (this tile).
        n_prev = (j * tlane).astype(jnp.float32)   # all previous tiles are full
        n_tot = n_prev + cnt
        delta = mu - sum_ref[...] / n_prev
        m2_ref[...] = m2_ref[...] + m2 + delta * delta * (n_prev * cnt / n_tot)
        sum_ref[...] = sum_ref[...] + s


def _combine_kernel(sum_ref, m2_ref, gamma_ref, beta_ref,
                    scale_ref, bias_ref, *, hw, eps):
    """Tiny fused glue: per-channel Chan combine -> per-row scale/bias."""
    s = sum_ref[...]                                          # (B, C) f32
    m2 = m2_ref[...]                                          # (B, C)
    b = s.shape[0]
    mu = s * (1.0 / hw)                                       # per-row means
    chan_mean = jnp.mean(mu, axis=0, keepdims=True)           # (1, C)
    dm = mu - chan_mean
    chan_var = (jnp.sum(m2, axis=0, keepdims=True)
                + hw * jnp.sum(dm * dm, axis=0, keepdims=True)) * (1.0 / (b * hw))
    sc = gamma_ref[...] * jax.lax.rsqrt(chan_var + eps)       # (1, C)
    bi = beta_ref[...] - chan_mean * sc
    scale_ref[...] = jnp.broadcast_to(sc, s.shape)            # (B, C)
    bias_ref[...] = jnp.broadcast_to(bi, s.shape)


def _affine_rows_kernel(x_ref, scale_ref, bias_ref, o_ref):
    """Streamed normalize: one mul + one add per element, native-dtype output."""
    x = x_ref[...].astype(jnp.float32)
    o_ref[...] = (x * scale_ref[...] + bias_ref[...]).astype(o_ref.dtype)


# ---------------- tile-size selection ----------------

def _fused_channel_tile(B, C, hw, itemsize, budget):
    """Largest channel tile for the single-pass path, or None if infeasible."""
    hw_pad = _round_up(hw, 128)
    # Per padded channel: 2x double-buffered input + 2x output (native dtype)
    # plus ~3 live float32 temporaries inside the kernel.
    per_ch = B * hw_pad * (4 * itemsize + 3 * 4)
    if 8 * per_ch > budget:
        return None
    max_tc = max(8, (budget // per_ch) // 8 * 8)
    if C > 32:
        target = _round_up(pl.cdiv(C, 4), 8)   # >= ~4 steps: pipeline + v7x TCs
    else:
        target = _round_up(C, 8)
    tc = min(max_tc, target)
    return C if tc >= C else tc


def _two_pass_tiles(R, hw, itemsize, tile_bytes, tile_rows, tile_lanes):
    hw_pad = _round_up(hw, 128)
    if tile_lanes is not None:
        tlane = tile_lanes
    elif 8 * hw_pad * itemsize <= tile_bytes:
        tlane = hw                              # full rows, no lane tiling
    else:
        # Huge spatial size: lane-tile so one (8, tlane) slab ~= tile_bytes.
        tlane = max(128, (tile_bytes // (8 * itemsize)) // 128 * 128)
        tlane = min(tlane, hw_pad)
    if tile_rows is not None:
        tbr = tile_rows
    else:
        lane_pad = hw_pad if tlane == hw else tlane
        tbr = (tile_bytes // (lane_pad * itemsize)) // 8 * 8
        tbr = max(8, min(tbr, _round_up(R, 8)))
        # Keep >= ~8 row-grid steps so v7x megacore has a "parallel" axis to shard.
        tbr = min(tbr, max(8, _round_up(pl.cdiv(R, 8), 8)))
    return tbr, tlane


# ---------------- two-pass (tiled) path ----------------

def _batchnorm_two_pass(x2, gamma, beta, B, C, hw, eps, out_dtype, itemsize,
                        vmem_limit, tile_bytes, tile_rows, tile_lanes):
    """x2: (R, hw), R = B*C rows ordered sample-major / channel-minor."""
    R = B * C
    tbr, tlane = _two_pass_tiles(R, hw, itemsize, tile_bytes,
                                 tile_rows, tile_lanes)
    grid = (pl.cdiv(R, tbr), pl.cdiv(hw, tlane))

    # Pass 1: per-row sum + centered M2; lane tiles reduced in-kernel (axis j).
    row_sum, row_m2 = pl.pallas_call(
        functools.partial(_row_stats_kernel, hw=hw, tlane=tlane),
        out_shape=(jax.ShapeDtypeStruct((R, 1), jnp.float32),
                   jax.ShapeDtypeStruct((R, 1), jnp.float32)),
        grid=grid,
        in_specs=[pl.BlockSpec((tbr, tlane), lambda i, j: (i, j))],
        out_specs=(pl.BlockSpec((tbr, 1), lambda i, j: (i, 0)),
                   pl.BlockSpec((tbr, 1), lambda i, j: (i, 0))),
        compiler_params=pltpu.CompilerParams(
            dimension_semantics=("parallel", "arbitrary"),
            vmem_limit_bytes=vmem_limit),
        cost_estimate=pl.CostEstimate(
            flops=4 * R * hw, transcendentals=0,
            bytes_accessed=R * hw * itemsize + 8 * R),
    )(x2)

    # Tiny fused combine kernel: (B, C) stats + gamma/beta -> (B, C) scale/bias.
    scale_bc, bias_bc = pl.pallas_call(
        functools.partial(_combine_kernel, hw=hw, eps=eps),
        out_shape=(jax.ShapeDtypeStruct((B, C), jnp.float32),
                   jax.ShapeDtypeStruct((B, C), jnp.float32)),
    )(row_sum.reshape(B, C), row_m2.reshape(B, C),
      gamma.reshape(1, C), beta.reshape(1, C))
    row_scale = scale_bc.reshape(R, 1)        # free reshapes
    row_bias = bias_bc.reshape(R, 1)

    # Pass 2: streamed y = x * scale + bias in the input dtype.
    y2 = pl.pallas_call(
        _affine_rows_kernel,
        out_shape=jax.ShapeDtypeStruct((R, hw), out_dtype),
        grid=grid,
        in_specs=[pl.BlockSpec((tbr, tlane), lambda i, j: (i, j)),
                  pl.BlockSpec((tbr, 1), lambda i, j: (i, 0)),
                  pl.BlockSpec((tbr, 1), lambda i, j: (i, 0))],
        out_specs=pl.BlockSpec((tbr, tlane), lambda i, j: (i, j)),
        compiler_params=pltpu.CompilerParams(
            dimension_semantics=("parallel", "parallel"),
            vmem_limit_bytes=vmem_limit),
        cost_estimate=pl.CostEstimate(
            flops=2 * R * hw, transcendentals=0,
            bytes_accessed=2 * R * hw * itemsize),
    )(x2, row_scale, row_bias)
    return y2


# ---------------- wrapper ----------------

def my_batchnorm2d(x, gamma, beta, eps=EPS, *, force_two_pass=False,
                   _tile_rows=None, _tile_lanes=None):
    """x: [T, N, C, H, W]; gamma, beta: [C].  Output dtype == x.dtype."""
    T, N, C, H, W = x.shape
    B, hw = T * N, H * W
    out_dtype = x.dtype
    itemsize = jnp.dtype(x.dtype).itemsize
    gamma = gamma.astype(jnp.float32)
    beta = beta.astype(jnp.float32)
    vmem_limit, tile_bytes = _vmem_budgets()

    tc = None if force_two_pass else _fused_channel_tile(B, C, hw, itemsize,
                                                         vmem_limit)
    if tc is not None:
        # Fused single-pass path: x read from HBM exactly once, channel-tiled
        # so input DMA / compute / output DMA pipeline and v7x can shard.
        x3 = x.reshape(B, C, hw)                              # free reshape
        y3 = pl.pallas_call(
            functools.partial(_fused_bn_kernel, eps=eps),
            out_shape=jax.ShapeDtypeStruct((B, C, hw), out_dtype),
            grid=(pl.cdiv(C, tc),),
            in_specs=[pl.BlockSpec((B, tc, hw), lambda c: (0, c, 0)),
                      pl.BlockSpec((1, tc, 1), lambda c: (0, c, 0)),
                      pl.BlockSpec((1, tc, 1), lambda c: (0, c, 0))],
            out_specs=pl.BlockSpec((B, tc, hw), lambda c: (0, c, 0)),
            compiler_params=pltpu.CompilerParams(
                dimension_semantics=("parallel",),
                vmem_limit_bytes=vmem_limit),
            cost_estimate=pl.CostEstimate(
                flops=6 * B * C * hw, transcendentals=C,
                bytes_accessed=2 * B * C * hw * itemsize),
        )(x3, gamma.reshape(1, C, 1), beta.reshape(1, C, 1))
        return y3.reshape(T, N, C, H, W)

    # Two-pass path: rows = (sample, channel) pairs packed densely in sublanes,
    # lane-tiled when H*W is too large for one row-slab.
    x2 = x.reshape(B * C, hw)                                 # free reshape
    y2 = _batchnorm_two_pass(x2, gamma, beta, B, C, hw, eps, out_dtype,
                             itemsize, vmem_limit, tile_bytes,
                             _tile_rows, _tile_lanes)
    return y2.reshape(T, N, C, H, W)


# ---------------- reference (pure JAX, for correctness check) ----------------

def _reference(x, gamma, beta, eps=EPS):
    T, N, C, H, W = x.shape
    xf = x.astype(jnp.float32).reshape(T * N, C, H, W)
    mean = xf.mean(axis=(0, 2, 3))
    var = ((xf - mean[None, :, None, None]) ** 2).mean(axis=(0, 2, 3))  # biased
    y = (xf - mean[None, :, None, None]) / jnp.sqrt(var[None, :, None, None] + eps)
    y = y * gamma[None, :, None, None] + beta[None, :, None, None]
    return y.reshape(T, N, C, H, W)


if __name__ == "__main__":
    # step (time dim) = 4, batch = 2, channels = 4, spatial = 16x16
    T, N, C, H, W = 4, 2, 4, 16, 16
    key = jax.random.PRNGKey(0)
    x = jax.random.normal(key, (T, N, C, H, W), dtype=jnp.float32) * 2.0 + 0.3
    gamma = 0.5 + 0.1 * jnp.arange(C, dtype=jnp.float32)
    beta = 0.05 * jnp.arange(C, dtype=jnp.float32) - 0.1
    ref = _reference(x, gamma, beta)

    # Default (fused, single HBM read of x, channel-tiled) path.
    out = jax.block_until_ready(my_batchnorm2d(x, gamma, beta))
    assert out.shape == (T, N, C, H, W) and out.dtype == x.dtype
    assert jnp.allclose(out, ref, atol=1e-4, rtol=1e-4), "fused path mismatch"

    # Tiled two-pass fallback: evenly-dividing row tiles ...
    out_tp = jax.block_until_ready(
        my_batchnorm2d(x, gamma, beta, force_two_pass=True, _tile_rows=8))
    assert jnp.allclose(out_tp, ref, atol=1e-4, rtol=1e-4), "two-pass mismatch"

    # ... a non-dividing row tile (partial last block) ...
    out_tp2 = jax.block_until_ready(
        my_batchnorm2d(x, gamma, beta, force_two_pass=True, _tile_rows=24))
    assert jnp.allclose(out_tp2, ref, atol=1e-4, rtol=1e-4), "partial-row mismatch"

    # ... and lane tiling (in-kernel Chan combine across hw tiles).
    out_lt = jax.block_until_ready(
        my_batchnorm2d(x, gamma, beta, force_two_pass=True,
                       _tile_rows=8, _tile_lanes=128))
    assert jnp.allclose(out_lt, ref, atol=1e-4, rtol=1e-4), "lane-tiled mismatch"

    # Odd spatial size (hw not a multiple of 128) and C < 8.
    T2, N2, C2, H2, W2 = 2, 2, 3, 12, 12
    x_b = jax.random.normal(jax.random.PRNGKey(1), (T2, N2, C2, H2, W2),
                            dtype=jnp.float32) * 1.5 - 0.2
    g_b = jnp.array([0.7, 1.1, 0.9], dtype=jnp.float32)
    b_b = jnp.array([0.1, -0.2, 0.05], dtype=jnp.float32)
    ref_b = _reference(x_b, g_b, b_b)
    out_b = jax.block_until_ready(my_batchnorm2d(x_b, g_b, b_b))
    assert jnp.allclose(out_b, ref_b, atol=1e-4, rtol=1e-4), "odd-shape mismatch"
    out_b2 = jax.block_until_ready(
        my_batchnorm2d(x_b, g_b, b_b, force_two_pass=True,
                       _tile_rows=8, _tile_lanes=128))
    assert jnp.allclose(out_b2, ref_b, atol=1e-4, rtol=1e-4), "masked lane mismatch"

    # Native-dtype streaming: bf16 in -> bf16 out, f32 accumulation inside.
    x_bf = x.astype(jnp.bfloat16)
    ref_bf = _reference(x_bf, gamma, beta)
    out_bf = jax.block_until_ready(my_batchnorm2d(x_bf, gamma, beta))
    assert out_bf.dtype == jnp.bfloat16
    assert jnp.allclose(out_bf.astype(jnp.float32), ref_bf,
                        atol=5e-2, rtol=5e-2), "bf16 mismatch"

    print("KERNEL_OK")
</pallas_src>

<mosaic_0001>
module attributes {stable_mosaic.version = 11 : i64} {
  func.func @_fused_bn_kernel(%arg0: i32, %arg1: memref<8x4x256xf32, #tpu.memory_space<vmem>>, %arg2: memref<1x4x1xf32, #tpu.memory_space<vmem>>, %arg3: memref<1x4x1xf32, #tpu.memory_space<vmem>>, %arg4: memref<8x4x256xf32, #tpu.memory_space<vmem>>) attributes {dimension_semantics = [#tpu.dimension_semantics<parallel>], iteration_bounds = array<i64: 1>, scalar_prefetch = 0 : i64, scratch_operands = 0 : i64, tpu.core_type = #tpu.core_type<tc>, window_params = [{transform_indices = @transform_0, window_bounds = array<i64: 8, 4, 256>}, {transform_indices = @transform_1, window_bounds = array<i64: 1, 4, 1>}, {transform_indices = @transform_2, window_bounds = array<i64: 1, 4, 1>}, {transform_indices = @transform_3, window_bounds = array<i64: 8, 4, 256>}]} {
    %c0 = arith.constant 0 : index
    %c0_0 = arith.constant 0 : index
    %c0_1 = arith.constant 0 : index
    %0 = vector.load %arg1[%c0, %c0_0, %c0_1] : memref<8x4x256xf32, #tpu.memory_space<vmem>>, vector<8x4x256xf32>
    %cst = arith.constant dense<0.000000e+00> : vector<8x4xf32>
    %1 = vector.multi_reduction <add>, %0, %cst [2] : vector<8x4x256xf32> to vector<8x4xf32>
    %2 = vector.shape_cast %1 : vector<8x4xf32> to vector<8x4x1xf32>
    %cst_2 = arith.constant 3.906250e-03 : f32
    %3 = vector.broadcast %cst_2 : f32 to vector<8x4x1xf32>
    %4 = arith.mulf %2, %3 : vector<8x4x1xf32>
    %5 = vector.broadcast %4 : vector<8x4x1xf32> to vector<8x4x256xf32>
    %6 = arith.subf %0, %5 : vector<8x4x256xf32>
    %7 = arith.mulf %6, %6 : vector<8x4x256xf32>
    %cst_3 = arith.constant dense<0.000000e+00> : vector<8x4xf32>
    %8 = vector.multi_reduction <add>, %7, %cst_3 [2] : vector<8x4x256xf32> to vector<8x4xf32>
    %9 = vector.shape_cast %8 : vector<8x4xf32> to vector<8x4x1xf32>
    %cst_4 = arith.constant dense<0.000000e+00> : vector<4x1xf32>
    %10 = vector.multi_reduction <add>, %4, %cst_4 [0] : vector<8x4x1xf32> to vector<4x1xf32>
    %11 = vector.shape_cast %10 : vector<4x1xf32> to vector<1x4x1xf32>
    %cst_5 = arith.constant 8.000000e+00 : f32
    %12 = vector.broadcast %cst_5 : f32 to vector<1x4x1xf32>
    %13 = arith.divf %11, %12 : vector<1x4x1xf32>
    %14 = vector.broadcast %13 : vector<1x4x1xf32> to vector<8x4x1xf32>
    %15 = arith.subf %4, %14 : vector<8x4x1xf32>
    %cst_6 = arith.constant dense<0.000000e+00> : vector<4x1xf32>
    %16 = vector.multi_reduction <add>, %9, %cst_6 [0] : vector<8x4x1xf32> to vector<4x1xf32>
    %17 = vector.shape_cast %16 : vector<4x1xf32> to vector<1x4x1xf32>
    %18 = arith.mulf %15, %15 : vector<8x4x1xf32>
    %cst_7 = arith.constant dense<0.000000e+00> : vector<4x1xf32>
    %19 = vector.multi_reduction <add>, %18, %cst_7 [0] : vector<8x4x1xf32> to vector<4x1xf32>
    %20 = vector.shape_cast %19 : vector<4x1xf32> to vector<1x4x1xf32>
    %cst_8 = arith.constant 2.560000e+02 : f32
    %21 = vector.broadcast %cst_8 : f32 to vector<1x4x1xf32>
    %22 = arith.mulf %21, %20 : vector<1x4x1xf32>
    %23 = arith.addf %17, %22 : vector<1x4x1xf32>
    %cst_9 = arith.constant 4.8828125E-4 : f32
    %24 = vector.broadcast %cst_9 : f32 to vector<1x4x1xf32>
    %25 = arith.mulf %23, %24 : vector<1x4x1xf32>
    %c0_10 = arith.constant 0 : index
    %c0_11 = arith.constant 0 : index
    %c0_12 = arith.constant 0 : index
    %26 = vector.load %arg2[%c0_10, %c0_11, %c0_12] : memref<1x4x1xf32, #tpu.memory_space<vmem>>, vector<1x4x1xf32>
    %cst_13 = arith.constant 9.99999974E-6 : f32
    %27 = vector.broadcast %cst_13 : f32 to vector<1x4x1xf32>
    %28 = arith.addf %25, %27 : vector<1x4x1xf32>
    %29 = math.rsqrt %28 : vector<1x4x1xf32>
    %30 = arith.mulf %26, %29 : vector<1x4x1xf32>
    %c0_14 = arith.constant 0 : index
    %c0_15 = arith.constant 0 : index
    %c0_16 = arith.constant 0 : index
    %31 = vector.load %arg3[%c0_14, %c0_15, %c0_16] : memref<1x4x1xf32, #tpu.memory_space<vmem>>, vector<1x4x1xf32>
    %32 = arith.mulf %13, %30 : vector<1x4x1xf32>
    %33 = arith.subf %31, %32 : vector<1x4x1xf32>
    %34 = vector.broadcast %30 : vector<1x4x1xf32> to vector<8x4x256xf32>
    %35 = arith.mulf %0, %34 : vector<8x4x256xf32>
    %36 = vector.broadcast %33 : vector<1x4x1xf32> to vector<8x4x256xf32>
    %37 = arith.addf %35, %36 : vector<8x4x256xf32>
    %c0_17 = arith.constant 0 : index
    %c0_18 = arith.constant 0 : index
    %c0_19 = arith.constant 0 : index
    %38 = vector.load %arg4[%c0_17, %c0_18, %c0_19] : memref<8x4x256xf32, #tpu.memory_space<vmem>>, vector<8x4x256xf32>
    tpu.vector_store %arg4[%c0_17, %c0_18, %c0_19], %37 {strides = array<i32>} : memref<8x4x256xf32, #tpu.memory_space<vmem>>, vector<8x4x256xf32>,
    return
  }
  func.func @transform_0(%arg0: i32) -> (i32, i32, i32) {
    %c0_i32 = arith.constant 0 : i32
    %c0_i32_0 = arith.constant 0 : i32
    %c0_i32_1 = arith.constant 0 : i32
    return %c0_i32, %arg0, %c0_i32_0 : i32, i32, i32
  }
  func.func @transform_1(%arg0: i32) -> (i32, i32, i32) {
    %c0_i32 = arith.constant 0 : i32
    %c0_i32_0 = arith.constant 0 : i32
    %c0_i32_1 = arith.constant 0 : i32
    return %c0_i32, %arg0, %c0_i32_0 : i32, i32, i32
  }
  func.func @transform_2(%arg0: i32) -> (i32, i32, i32) {
    %c0_i32 = arith.constant 0 : i32
    %c0_i32_0 = arith.constant 0 : i32
    %c0_i32_1 = arith.constant 0 : i32
    return %c0_i32, %arg0, %c0_i32_0 : i32, i32, i32
  }
  func.func @transform_3(%arg0: i32) -> (i32, i32, i32) {
    %c0_i32 = arith.constant 0 : i32
    %c0_i32_0 = arith.constant 0 : i32
    %c0_i32_1 = arith.constant 0 : i32
    return %c0_i32, %arg0, %c0_i32_0 : i32, i32, i32
  }
}

</mosaic_0001>

<bundles_post_ra>
// kernel: tpu_custom_call.1
= control target key start
LH: loop header
LB: loop body
LE: loop exit
PB: predicated region body
PF: predicated region fallthrough
CT: control target
= control target key end

     0   :  { %8 = vsyncpa [#allocation3], 0  ;;  %s671_s0 = inlined_call_operand.hbm [shape: f32[8,4,256], index: 0, kind: input, shape index: {}]   ;;  %s672_s1 = inlined_call_operand.vmem [shape: f32[1,4,1], index: 1, kind: input, shape index: {}]   ;;  %s673_s2 = inlined_call_operand.vmem [shape: f32[1,4,1], index: 2, kind: input, shape index: {}]   ;;  %s674_s3 = inlined_call_operand.hbm [shape: f32[8,4,256], index: 3, kind: output, shape index: {}]  }
   0x1   :  { %9 = vsyncpa [#allocation4], 0  ;;  %s462_s12 = smov [#allocation2]  }
   0x2   :  { %s15_s13 = sshll.u32 %s462_s12, 4  ;;  %s16_s13 = int_to_ptr.vmem [resolvable:$true] %s15_s13 }
   0x3   :  { %s426_s14 = scalar_lea.vmem %s16_s13, 1024  ;;  %p431_p1 = scmp.lt.s32.totalorder %s16_s13, %s16_s13 }
   0x4   :  { %p427_p0 = scmp.ne.s32.totalorder %s16_s13, %s426_s14  ;;  %p432_p2 = scmp.lt.s32.totalorder %s426_s14, %s426_s14 }
   0x6   :  { %p433_p3 = por %p432_p2, %p431_p1 }
   0x8   :  { %p434_p4 = pnand %p433_p3, %p427_p0 }
   0xa   :  { %437 = shalt.err (!%p434_p4)
}
   0xb   :  { %s463_s15 = smov 128   ;;  %s464_s16 = smov 8  }
   0xc   :  { %21 = dma.hbm_to_vmem [thread:$0]  %s671_s0, 1024, %s16_s13, [#allocation3], %s463_s15, %s463_s15, %s464_s16  }
   0xd   :  { %458 = dma.done.wait [#allocation3], 1024  }
   0xe   :  { %459 = vsyncadd [#allocation3], 4294966272  ;;  %vm61_vm0 = vcmask 1043456   ;;  %v494_v0 = vld [vmem:[#allocation2] sm:$0xff]  ;;  %v496_v1 = vld [vmem:[#allocation2 + $0x10] sm:$0xff]  ;;  %v121_v42 = vlaneseq }
   0xf   :  { %v498_v2 = vld [vmem:[#allocation2 + $0x8] sm:$0xff]  ;;  %v45_v3 = vcombine.high %v494_v0, %v494_v0  ;;  %v62_v4 = vsel %vm61_vm0, %v494_v0, 0.0  ;;  %v47_v5 = vcombine.high %v496_v1, %v496_v1  ;;  %v72_v6 = vsel %vm61_vm0, %v496_v1, 0.0  ;;  %v508_v7 = vld [vmem:[#allocation2 + $0x18] sm:$0xff]  ;;  %v510_v8 = vld [vmem:[#allocation2 + $0x20] sm:$0xff] }
  0x10   :  { %v46_v9 = vcombine.high %v498_v2, %v498_v2  ;;  %v67_v10 = vsel %vm61_vm0, %v498_v2, 0.0  ;;  %v48_v11 = vcombine.high %v508_v7, %v508_v7  ;;  %v518_v12 = vld [vmem:[#allocation2 + $0x28] sm:$0xff]  ;;  %v77_v15 = vsel %vm61_vm0, %v508_v7, 0.0  ;;  %v528_v21 = vld [vmem:[#allocation2 + $0x30] sm:$0xff]  ;;  %v530_v22 = vld [vmem:[#allocation2 + $0x38] sm:$0xff] }
  0x11   :  { %v63_v13 = vsel %vm61_vm0, %v45_v3, 0.0  ;;  %v73_v14 = vsel %vm61_vm0, %v47_v5, 0.0  ;;  %v49_v16 = vcombine.high %v510_v8, %v510_v8  ;;  %v50_v23 = vcombine.high %v518_v12, %v518_v12 }
  0x12   :  { %v64_v17 = vadd.f32 %v63_v13, %v62_v4  ;;  %v74_v18 = vadd.f32 %v73_v14, %v72_v6  ;;  %v68_v19 = vsel %vm61_vm0, %v46_v9, 0.0  ;;  %v78_v20 = vsel %vm61_vm0, %v48_v11, 0.0 }
  0x13   :  { %v69_v24 = vadd.f32 %v68_v19, %v67_v10  ;;  %v79_v25 = vadd.f32 %v78_v20, %v77_v15  ;;  %v82_v26 = vsel %vm61_vm0, %v510_v8, 0.0  ;;  %v83_v27 = vsel %vm61_vm0, %v49_v16, 0.0 }
  0x14   :  { %65 = vadd.xlane.f32.xlu0 %v64_v17  ;;  %75 = vadd.xlane.f32.xlu1 %v74_v18  ;;  %v87_v28 = vsel %vm61_vm0, %v518_v12, 0.0  ;;  %v88_v29 = vsel %vm61_vm0, %v50_v23, 0.0  ;;  %v51_v30 = vcombine.high %v528_v21, %v528_v21  ;;  %v52_v31 = vcombine.high %v530_v22, %v530_v22 }
  0x15   :  { %v84_v32 = vadd.f32 %v83_v27, %v82_v26  ;;  %v89_v33 = vadd.f32 %v88_v29, %v87_v28  ;;  %v92_v34 = vsel %vm61_vm0, %v528_v21, 0.0  ;;  %v97_v36 = vsel %vm61_vm0, %v530_v22, 0.0 }
  0x16   :  { %v93_v35 = vsel %vm61_vm0, %v51_v30, 0.0  ;;  %v98_v37 = vsel %vm61_vm0, %v52_v31, 0.0  ;;  %v465_v40 = vmov 839922192   ;;  %v122_v44 = vshrl.u32 %v121_v42, 7 }
  0x17   :  { %v94_v38 = vadd.f32 %v93_v35, %v92_v34  ;;  %v99_v39 = vadd.f32 %v98_v37, %v97_v36  ;;  %v119_v41 = vunpack.c.l.s4 %v465_v40 }
  0x18   :  { %70 = vadd.xlane.f32.xlu0 %v69_v24  ;;  %80 = vadd.xlane.f32.xlu1 %v79_v25 }
  0x19   :  { %v120_v43 = vunpack.c.0.s8 %v119_v41 }
  0x1b   :  { %v550_v45 = vsub.s32 %v120_v43, %v122_v44 }
  0x1c   :  { %85 = vadd.xlane.f32.xlu0 %v84_v32  ;;  %90 = vadd.xlane.f32.xlu1 %v89_v33 }
  0x20   :  { %95 = vadd.xlane.f32.xlu0 %v94_v38  ;;  %100 = vadd.xlane.f32.xlu1 %v99_v39 }
  0x9d   :  { %v66_v46 = vpop.xlane.xlu0 %65  ;;  %v76_v47 = vpop.xlane.xlu1 %75 }
  0x9e   :  { %v552_v48 = vmul.f32 0.00390625, %v66_v46  ;;  %v554_v49 = vmul.f32 0.00390625, %v76_v47 }
  0xa0   :  { %v124_v50 = vrot.slane %v552_v48, %v550_v45  ;;  %v138_v51 = vrot.slane %v554_v49, %v550_v45  ;;  %v262_v58 = vsel %vm61_vm0, %v552_v48, 0.0  ;;  %v265_v62 = vsel %vm61_vm0, %v554_v49, 0.0 }
  0xa1   :  { %v71_v52 = vpop.xlane.xlu0 %70  ;;  %v81_v53 = vpop.xlane.xlu1 %80 }
  0xa2   :  { %v560_v54 = vmul.f32 0.00390625, %v71_v52  ;;  %v562_v55 = vmul.f32 0.00390625, %v81_v53  ;;  %v182_v56 = vsub.f32 %v494_v0, %v124_v50  ;;  %v184_v57 = vsub.f32 %v496_v1, %v138_v51 }
  0xa4   :  { %v131_v59 = vrot.slane %v560_v54, %v550_v45  ;;  %v263_v60 = vsel %vm61_vm0, %v560_v54, 0.0  ;;  %v145_v61 = vrot.slane %v562_v55, %v550_v45  ;;  %v190_v5 = vmul.f32 %v182_v56, %v182_v56 }
  0xa5   :  { %v264_v63 = vadd.f32 %v263_v60, %v262_v58  ;;  %v86_v3 = vpop.xlane.xlu0 %85  ;;  %v91_v4 = vpop.xlane.xlu1 %90  ;;  %v192_v6 = vmul.f32 %v184_v57, %v184_v57  ;;  %v267_v9 = vsel %vm61_vm0, %v562_v55, 0.0 }
  0xa6   :  { %v578_v10 = vmul.f32 0.00390625, %v86_v3  ;;  %v580_v11 = vmul.f32 0.00390625, %v91_v4  ;;  %v183_v13 = vsub.f32 %v498_v2, %v131_v59  ;;  %v206_v15 = vcombine.high %v190_v5, %v190_v5 }
  0xa7   :  { %v266_v14 = vadd.f32 %v265_v62, %v264_v63  ;;  %v208_v16 = vcombine.high %v192_v6, %v192_v6  ;;  %v185_v17 = vsub.f32 %v508_v7, %v145_v61  ;;  %v222_v23 = vsel %vm61_vm0, %v190_v5, 0.0 }
  0xa8   :  { %v152_v18 = vrot.slane %v578_v10, %v550_v45  ;;  %v269_v19 = vsel %vm61_vm0, %v578_v10, 0.0  ;;  %v159_v20 = vrot.slane %v580_v11, %v550_v45  ;;  %v223_v27 = vsel %vm61_vm0, %v206_v15, 0.0 }
  0xa9   :  { %v268_v24 = vadd.f32 %v267_v9, %v266_v14  ;;  %v96_v25 = vpop.xlane.xlu0 %95  ;;  %v101_v26 = vpop.xlane.xlu1 %100  ;;  %v232_v28 = vsel %vm61_vm0, %v192_v6, 0.0  ;;  %v233_v29 = vsel %vm61_vm0, %v208_v16, 0.0  ;;  %v271_v30 = vsel %vm61_vm0, %v580_v11, 0.0 }
  0xaa   :  { %v108_v31 = vmul.f32 0.00390625, %v96_v25  ;;  %v109_v32 = vmul.f32 0.00390625, %v101_v26  ;;  %v224_v33 = vadd.f32 %v223_v27, %v222_v23  ;;  %v191_v35 = vmul.f32 %v183_v13, %v183_v13 }
  0xab   :  { %v270_v34 = vadd.f32 %v269_v19, %v268_v24  ;;  %v193_v36 = vmul.f32 %v185_v17, %v185_v17  ;;  %v186_v37 = vsub.f32 %v510_v8, %v152_v18  ;;  %v234_v41 = vadd.f32 %v233_v29, %v232_v28 }
  0xac   :  { %v166_v38 = vrot.slane %v108_v31, %v550_v45  ;;  %v273_v39 = vsel %vm61_vm0, %v108_v31, 0.0  ;;  %v173_v40 = vrot.slane %v109_v32, %v550_v45  ;;  %225 = vadd.xlane.f32.xlu0 %v224_v33  ;;  %v275_v43 = vsel %vm61_vm0, %v109_v32, 0.0 }
  0xad   :  { %v272_v42 = vadd.f32 %v271_v30, %v270_v34  ;;  %v207_v44 = vcombine.high %v191_v35, %v191_v35  ;;  %v209_v46 = vcombine.high %v193_v36, %v193_v36  ;;  %v227_v47 = vsel %vm61_vm0, %v191_v35, 0.0 }
  0xae   :  { %v194_v50 = vmul.f32 %v186_v37, %v186_v37  ;;  %v187_v51 = vsub.f32 %v518_v12, %v159_v20  ;;  %v188_v52 = vsub.f32 %v528_v21, %v166_v38  ;;  %v237_v57 = vsel %vm61_vm0, %v193_v36, 0.0 }
  0xaf   :  { %v274_v53 = vadd.f32 %v273_v39, %v272_v42  ;;  %v228_v56 = vsel %vm61_vm0, %v207_v44, 0.0  ;;  %v189_v58 = vsub.f32 %v530_v22, %v173_v40  ;;  %v238_v60 = vsel %vm61_vm0, %v209_v46, 0.0 }
  0xb0   :  { %235 = vadd.xlane.f32.xlu0 %v234_v41  ;;  %v229_v59 = vadd.f32 %v228_v56, %v227_v47  ;;  %v210_v61 = vcombine.high %v194_v50, %v194_v50  ;;  %v242_v62 = vsel %vm61_vm0, %v194_v50, 0.0  ;;  %v195_v3 = vmul.f32 %v187_v51, %v187_v51 }
  0xb1   :  { %v276_v63 = vadd.f32 %v275_v43, %v274_v53  ;;  %v196_v4 = vmul.f32 %v188_v52, %v188_v52  ;;  %v197_v5 = vmul.f32 %v189_v58, %v189_v58  ;;  %v239_v13 = vadd.f32 %v238_v60, %v237_v57 }
  0xb2   :  { %230 = vadd.xlane.f32.xlu1 %v229_v59  ;;  %v243_v6 = vsel %vm61_vm0, %v210_v61, 0.0  ;;  %v211_v15 = vcombine.high %v195_v3, %v195_v3  ;;  %v247_v16 = vsel %vm61_vm0, %v195_v3, 0.0  ;;  %v466_v59 = vmov 0  }
  0xb3   :  { %v610_v9 = vmul.f32 0.125, %v276_v63  ;;  %v244_v14 = vadd.f32 %v243_v6, %v242_v62  ;;  %v212_v17 = vcombine.high %v196_v4, %v196_v4  ;;  %v252_v18 = vsel %vm61_vm0, %v196_v4, 0.0  ;;  %406 = vset.pattern.permute.xlu0 %v466_v59  ;;  %407 = vset.pattern.permute.xlu1 %v466_v59 }
  0xb4   :  { %v213_v19 = vcombine.high %v197_v5, %v197_v5  ;;  %v248_v23 = vsel %vm61_vm0, %v211_v15, 0.0  ;;  %v257_v34 = vsel %vm61_vm0, %v197_v5, 0.0 }
  0xb5   :  { %v286_v20 = vsub.f32 %v109_v32, %v610_v9  ;;  %245 = vadd.xlane.f32.xlu0 %v244_v14  ;;  %v279_v24 = vsub.f32 %v552_v48, %v610_v9  ;;  %v280_v25 = vsub.f32 %v560_v54, %v610_v9  ;;  %v253_v26 = vsel %vm61_vm0, %v212_v17, 0.0 }
  0xb6   :  { %240 = vadd.xlane.f32.xlu1 %v239_v13  ;;  %v281_v27 = vsub.f32 %v554_v49, %v610_v9  ;;  %v249_v28 = vadd.f32 %v248_v23, %v247_v16  ;;  %v254_v29 = vadd.f32 %v253_v26, %v252_v18  ;;  %v282_v30 = vsub.f32 %v562_v55, %v610_v9 }
  0xb7   :  { %v283_v32 = vsub.f32 %v578_v10, %v610_v9  ;;  %v284_v48 = vsub.f32 %v580_v11, %v610_v9  ;;  %v285_v33 = vsub.f32 %v108_v31, %v610_v9  ;;  %v302_v54 = vmul.f32 %v279_v24, %v279_v24 }
  0xb8   :  { %v258_v35 = vsel %vm61_vm0, %v213_v19, 0.0  ;;  %v303_v49 = vmul.f32 %v280_v25, %v280_v25  ;;  %v304_v36 = vmul.f32 %v281_v27, %v281_v27  ;;  %v305_v55 = vmul.f32 %v282_v30, %v282_v30 }
  0xb9   :  { %255 = vadd.xlane.f32.xlu0 %v254_v29  ;;  %v310_v37 = vsel %vm61_vm0, %v302_v54, 0.0  ;;  %v259_v10 = vadd.f32 %v258_v35, %v257_v34  ;;  %v306_v40 = vmul.f32 %v283_v32, %v283_v32  ;;  %v307_v41 = vmul.f32 %v284_v48, %v284_v48  ;;  %v328_v54 = vld [vmem:[%s672_s1] sm:$0xf]  ;;  %s467_s1 = smov [#allocation5]  }
  0xba   :  { %250 = vadd.xlane.f32.xlu1 %v249_v28  ;;  %v311_v38 = vsel %vm61_vm0, %v303_v49, 0.0  ;;  %v313_v11 = vsel %vm61_vm0, %v304_v36, 0.0  ;;  %v315_v42 = vsel %vm61_vm0, %v305_v55, 0.0  ;;  %v308_v44 = vmul.f32 %v285_v33, %v285_v33  ;;  %v332_v49 = vld [vmem:[%s673_s2] sm:$0xf]  ;;  %s388_s2 = sshll.u32 %s467_s1, 4  ;;  %s389_s2 = int_to_ptr.vmem [resolvable:$true] %s388_s2 }
  0xbb   :  { %v312_v39 = vadd.f32 %v311_v38, %v310_v37  ;;  %v317_v46 = vsel %vm61_vm0, %v306_v40, 0.0  ;;  %v309_v50 = vmul.f32 %v286_v20, %v286_v20  ;;  %v319_v51 = vsel %vm61_vm0, %v307_v41, 0.0  ;;  %s438_s22 = scalar_lea.vmem %s389_s2, 1024  ;;  %p443_p6 = scmp.lt.s32.totalorder %s389_s2, %s389_s2 }
  0xbc   :  { %v321_v53 = vsel %vm61_vm0, %v308_v44, 0.0  ;;  %p439_p5 = scmp.ne.s32.totalorder %s389_s2, %s438_s22  ;;  %p444_p7 = scmp.lt.s32.totalorder %s438_s22, %s438_s22 }
  0xbd   :  { %v314_v31 = vadd.f32 %v313_v11, %v312_v39  ;;  %v323_v57 = vsel %vm61_vm0, %v309_v50, 0.0 }
  0xbe   :  { %260 = vadd.xlane.f32.xlu1 %v259_v10  ;;  %p445_p8 = por %p444_p7, %p443_p6 }
  0xbf   :  { %v316_v43 = vadd.f32 %v315_v42, %v314_v31 }
  0xc0   :  { %p446_p9 = pnand %p445_p8, %p439_p5 }
  0xc1   :  { %v318_v47 = vadd.f32 %v317_v46, %v316_v43 }
  0xc3   :  { %v320_v52 = vadd.f32 %v319_v51, %v318_v47 }
  0xc5   :  { %v322_v56 = vadd.f32 %v321_v53, %v320_v52 }
  0xc7   :  { %v324_v58 = vadd.f32 %v323_v57, %v322_v56 }
  0xc9   :  { %v325_v30 = vmul.f32 256.0, %v324_v58 }
 0x135   :  { %v226_v60 = vpop.xlane.xlu0 %225 }
 0x136   :  { %v287_v63 = vsel %vm61_vm0, %v226_v60, 0.0 }
 0x139   :  { %v236_v61 = vpop.xlane.xlu0 %235 }
 0x13a   :  { %v290_v5 = vsel %vm61_vm0, %v236_v61, 0.0 }
 0x13b   :  { %v231_v62 = vpop.xlane.xlu1 %230 }
 0x13c   :  { %v288_v3 = vsel %vm61_vm0, %v231_v62, 0.0 }
 0x13d   :  { %v289_v4 = vadd.f32 %v288_v3, %v287_v63 }
 0x13e   :  { %v246_v6 = vpop.xlane.xlu0 %245 }
 0x13f   :  { %v291_v13 = vadd.f32 %v290_v5, %v289_v4  ;;  %v241_v14 = vpop.xlane.xlu1 %240  ;;  %v294_v17 = vsel %vm61_vm0, %v246_v6, 0.0 }
 0x140   :  { %v292_v15 = vsel %vm61_vm0, %v241_v14, 0.0 }
 0x141   :  { %v293_v16 = vadd.f32 %v292_v15, %v291_v13 }
 0x142   :  { %v256_v20 = vpop.xlane.xlu0 %255 }
 0x143   :  { %v295_v18 = vadd.f32 %v294_v17, %v293_v16  ;;  %v251_v19 = vpop.xlane.xlu1 %250  ;;  %v298_v25 = vsel %vm61_vm0, %v256_v20, 0.0 }
 0x144   :  { %v296_v23 = vsel %vm61_vm0, %v251_v19, 0.0 }
 0x145   :  { %v297_v24 = vadd.f32 %v296_v23, %v295_v18 }
 0x147   :  { %v299_v26 = vadd.f32 %v298_v25, %v297_v24  ;;  %v261_v27 = vpop.xlane.xlu1 %260 }
 0x148   :  { %v300_v28 = vsel %vm61_vm0, %v261_v27, 0.0 }
 0x149   :  { %v301_v29 = vadd.f32 %v300_v28, %v299_v26 }
 0x14b   :  { %v326_v32 = vadd.f32 %v325_v30, %v301_v29 }
 0x14d   :  { %v327_v48 = vmul.f32 0.00048828125, %v326_v32 }
 0x14f   :  { %v329_v33 = vadd.f32 1e-05, %v327_v48 }
 0x151   :  { %416 = vrsqrt.f32 %v329_v33 }
 0x15e   :  { %v417_v34 = vpop.eup %416 }
 0x15f   :  { %v331_v35 = vmul.f32 %v417_v34, %v328_v54 }
 0x161   :  { %337 = vperm.xlu0 %406, %v331_v35   ;;  %v333_v36 = vmul.f32 %v331_v35, %v610_v9 }
 0x163   :  { %v334_v37 = vsub.f32 %v332_v49, %v333_v36 }
 0x165   :  { %357 = vperm.xlu1 %407, %v334_v37  }
 0x1dc   :  { %v338_v55 = vpop.permute.xlu0 %337 }
 0x1dd   :  { %v345_v38 = vrot.slane %v338_v55, %v550_v45 }
 0x1df   :  { %v347_v39 = vmul.f32 %v345_v38, %v494_v0  ;;  %v348_v11 = vmul.f32 %v345_v38, %v498_v2  ;;  %v349_v31 = vmul.f32 %v345_v38, %v496_v1  ;;  %v350_v41 = vmul.f32 %v345_v38, %v508_v7 }
 0x1e0   :  { %v358_v10 = vpop.permute.xlu1 %357  ;;  %v351_v9 = vmul.f32 %v345_v38, %v510_v8  ;;  %v352_v42 = vmul.f32 %v345_v38, %v518_v12  ;;  %v353_v43 = vmul.f32 %v345_v38, %v528_v21  ;;  %v354_v44 = vmul.f32 %v345_v38, %v530_v22 }
 0x1e1   :  { %v365_v40 = vrot.slane %v358_v10, %v550_v45 }
 0x1e3   :  { %v367_v46 = vadd.f32 %v365_v40, %v347_v39  ;;  %v368_v0 = vadd.f32 %v365_v40, %v348_v11  ;;  %v369_v47 = vadd.f32 %v365_v40, %v349_v31  ;;  %v370_v45 = vadd.f32 %v365_v40, %v350_v41 }
 0x1e4   :  { %v371_v50 = vadd.f32 %v365_v40, %v351_v9  ;;  %v372_v2 = vadd.f32 %v365_v40, %v352_v42  ;;  %v373_v51 = vadd.f32 %v365_v40, %v353_v43  ;;  %v374_v1 = vadd.f32 %v365_v40, %v354_v44 }
 0x1e5   :  { %375 = vst [vmem:[#allocation5] sm:$0xff] %v367_v46  ;;  %376 = vst [vmem:[#allocation5 + $0x8] sm:$0xff] %v368_v0 }
 0x1e6   :  { %377 = vst [vmem:[#allocation5 + $0x10] sm:$0xff] %v369_v47  ;;  %378 = vst [vmem:[#allocation5 + $0x18] sm:$0xff] %v370_v45 }
 0x1e7   :  { %379 = vst [vmem:[#allocation5 + $0x20] sm:$0xff] %v371_v50  ;;  %380 = vst [vmem:[#allocation5 + $0x28] sm:$0xff] %v372_v2 }
 0x1e8   :  { %381 = vst [vmem:[#allocation5 + $0x30] sm:$0xff] %v373_v51  ;;  %382 = vst [vmem:[#allocation5 + $0x38] sm:$0xff] %v374_v1 }
 0x1e9   :  { %449 = shalt.err (!%p446_p9)
}
 0x1ea   :  { %394 = dma.vmem_to_hbm [thread:$0]  %s389_s2, 1024, %s674_s3, [#allocation4], %s463_s15, %s463_s15, %s464_s16  }
 0x1eb   :  { %460 = dma.done.wait [#allocation4], 1024  }
 0x1ec   :  { %461 = vsyncadd [#allocation4], 4294966272 }
 0x1ed   :  { %398 = vsyncpa [#allocation3], 1 }
 0x1ee   :  { %399 = vsyncpa [#allocation4], 1 }

</bundles_post_ra>
